<compile_context>
chip_gen: v6e
topology: v6e:2x2x1
jax: 0.10.0
libtpu: 0.0.40
codegen_flags: <defaults>
</compile_context>

<pallas_src>
import functools

import jax
import jax.numpy as jnp
import numpy as np
from jax.experimental import pallas as pl
from jax.experimental.pallas import tpu as pltpu  # noqa: F401  (TPU backend)


# ----------------------------------------------------------------------------
# Pallas kernel: fused PixelNorm + n_layers x (Linear -> ReLU), one grid step.
# ----------------------------------------------------------------------------
def _noise_massage_kernel(noise_ref, w_ref, b_ref, out_ref, *, n_layers):
    # noise_ref: (B, S)      w_ref: (L, S, S)  (PyTorch (out_features, in_features))
    # b_ref:     (L, 1, S)   out_ref: (B, S)
    eps = 1e-8
    x = noise_ref[...].astype(jnp.float32)

    # PixelNorm over the feature dim (dim=1 of the (B, S) input).
    ms = jnp.mean(x * x, axis=-1, keepdims=True)
    x = x * jax.lax.rsqrt(ms + eps)

    # Stacked Linear -> ReLU.  Static unrolled loop: n_layers is small and
    # fixed; all layer weights are already resident in VMEM for this step.
    for i in range(n_layers):
        w = w_ref[i]                       # (S_out, S_in)
        b = b_ref[i]                       # (1, S_out)
        y = jax.lax.dot_general(
            x, w,
            dimension_numbers=(((1,), (1,)), ((), ())),   # x @ w.T without transposing
            preferred_element_type=jnp.float32,
        )
        x = jnp.maximum(y + b, 0.0)        # ReLU

    out_ref[...] = x.astype(out_ref.dtype)


# ----------------------------------------------------------------------------
# Wrapper
# ----------------------------------------------------------------------------
def noise_massage(noise, weights, biases):
    """noise: (B, S); weights: (L, S, S) in PyTorch (out, in) layout; biases: (L, S)."""
    B, S = noise.shape
    L = weights.shape[0]
    b3 = biases.reshape(L, 1, S)           # keep per-layer bias 2-D inside the kernel

    return pl.pallas_call(
        functools.partial(_noise_massage_kernel, n_layers=L),
        out_shape=jax.ShapeDtypeStruct((B, S), noise.dtype),
        grid=(1,),                          # single fused step: no per-step overhead
        in_specs=[
            pl.BlockSpec((B, S), lambda i: (0, 0)),
            pl.BlockSpec((L, S, S), lambda i: (0, 0, 0)),
            pl.BlockSpec((L, 1, S), lambda i: (0, 0, 0)),
        ],
        out_specs=pl.BlockSpec((B, S), lambda i: (0, 0)),
    )(noise, weights, b3)


# ----------------------------------------------------------------------------
# Pure-JAX reference (mirrors the intended PyTorch forward)
# ----------------------------------------------------------------------------
def ref_noise_massage(noise, weights, biases):
    eps = 1e-8
    x = noise
    x = x * jax.lax.rsqrt(jnp.mean(x * x, axis=1, keepdims=True) + eps)
    for i in range(weights.shape[0]):
        x = jnp.maximum(x @ weights[i].T + biases[i], 0.0)
    return x


# ----------------------------------------------------------------------------
if __name__ == "__main__":
    batch = 8
    n_style = 128        # style / noise dimensionality (lane-dense: 128 lanes)
    n_layers = 4

    key = jax.random.PRNGKey(0)
    kn, kw, kb = jax.random.split(key, 3)

    noise = jax.random.normal(kn, (batch, n_style), jnp.float32)
    # Synthetic deterministic Linear params (PyTorch (out, in) layout).
    weights = jax.random.normal(kw, (n_layers, n_style, n_style), jnp.float32)
    weights = weights * (1.0 / np.sqrt(n_style))
    biases = 0.1 * jax.random.normal(kb, (n_layers, n_style), jnp.float32)

    out = noise_massage(noise, weights, biases)
    out = jax.block_until_ready(out)

    ref = ref_noise_massage(noise, weights, biases)
    np.testing.assert_allclose(np.asarray(out), np.asarray(ref), rtol=1e-5, atol=1e-5)

    print("KERNEL_OK")
</pallas_src>

<mosaic_0001>
module attributes {stable_mosaic.version = 11 : i64} {
  func.func @_noise_massage_kernel(%arg0: i32, %arg1: memref<8x128xf32, #tpu.memory_space<vmem>>, %arg2: memref<4x128x128xf32, #tpu.memory_space<vmem>>, %arg3: memref<4x1x128xf32, #tpu.memory_space<vmem>>, %arg4: memref<8x128xf32, #tpu.memory_space<vmem>>) attributes {dimension_semantics = [#tpu.dimension_semantics<arbitrary>], iteration_bounds = array<i64: 1>, scalar_prefetch = 0 : i64, scratch_operands = 0 : i64, tpu.core_type = #tpu.core_type<tc>, window_params = [{pipeline_mode = #tpu.pipeline_mode<synchronous>, transform_indices = @transform_0, window_bounds = array<i64: 8, 128>}, {pipeline_mode = #tpu.pipeline_mode<synchronous>, transform_indices = @transform_1, window_bounds = array<i64: 4, 128, 128>}, {pipeline_mode = #tpu.pipeline_mode<synchronous>, transform_indices = @transform_2, window_bounds = array<i64: 4, 1, 128>}, {pipeline_mode = #tpu.pipeline_mode<synchronous>, transform_indices = @transform_3, window_bounds = array<i64: 8, 128>}]} {
    %c0 = arith.constant 0 : index
    %c0_0 = arith.constant 0 : index
    %0 = vector.load %arg1[%c0, %c0_0] : memref<8x128xf32, #tpu.memory_space<vmem>>, vector<8x128xf32>
    %1 = arith.mulf %0, %0 : vector<8x128xf32>
    %cst = arith.constant dense<0.000000e+00> : vector<8xf32>
    %2 = vector.multi_reduction <add>, %1, %cst [1] : vector<8x128xf32> to vector<8xf32>
    %3 = vector.shape_cast %2 : vector<8xf32> to vector<8x1xf32>
    %cst_1 = arith.constant 1.280000e+02 : f32
    %4 = vector.broadcast %cst_1 : f32 to vector<8x1xf32>
    %5 = arith.divf %3, %4 : vector<8x1xf32>
    %cst_2 = arith.constant 9.99999993E-9 : f32
    %6 = vector.broadcast %cst_2 : f32 to vector<8x1xf32>
    %7 = arith.addf %5, %6 : vector<8x1xf32>
    %8 = math.rsqrt %7 : vector<8x1xf32>
    %9 = vector.broadcast %8 : vector<8x1xf32> to vector<8x128xf32>
    %10 = arith.mulf %0, %9 : vector<8x128xf32>
    %c0_3 = arith.constant 0 : index
    %c0_4 = arith.constant 0 : index
    %c0_5 = arith.constant 0 : index
    %11 = vector.load %arg2[%c0_3, %c0_4, %c0_5] : memref<4x128x128xf32, #tpu.memory_space<vmem>>, vector<1x128x128xf32>
    %12 = vector.shape_cast %11 : vector<1x128x128xf32> to vector<128x128xf32>
    %c0_6 = arith.constant 0 : index
    %c0_7 = arith.constant 0 : index
    %c0_8 = arith.constant 0 : index
    %13 = vector.load %arg3[%c0_6, %c0_7, %c0_8] : memref<4x1x128xf32, #tpu.memory_space<vmem>>, vector<1x1x128xf32>
    %14 = vector.shape_cast %13 : vector<1x1x128xf32> to vector<1x128xf32>
    %cst_9 = arith.constant dense<0.000000e+00> : vector<8x128xf32>
    %15 = tpu.matmul %10, %12, %cst_9 {dimension_numbers = #tpu.dot_dimension_numbers<[1], [1], [0], [0], [0, 0, 1, 0], [], []>} : vector<8x128xf32>, vector<128x128xf32>, vector<8x128xf32> -> vector<8x128xf32>
    %16 = vector.broadcast %14 : vector<1x128xf32> to vector<8x128xf32>
    %17 = arith.addf %15, %16 : vector<8x128xf32>
    %cst_10 = arith.constant 0.000000e+00 : f32
    %18 = vector.broadcast %cst_10 : f32 to vector<8x128xf32>
    %19 = arith.maximumf %17, %18 : vector<8x128xf32>
    %c1 = arith.constant 1 : index
    %c0_11 = arith.constant 0 : index
    %c0_12 = arith.constant 0 : index
    %20 = vector.load %arg2[%c1, %c0_11, %c0_12] : memref<4x128x128xf32, #tpu.memory_space<vmem>>, vector<1x128x128xf32>
    %21 = vector.shape_cast %20 : vector<1x128x128xf32> to vector<128x128xf32>
    %c1_13 = arith.constant 1 : index
    %c0_14 = arith.constant 0 : index
    %c0_15 = arith.constant 0 : index
    %22 = vector.load %arg3[%c1_13, %c0_14, %c0_15] : memref<4x1x128xf32, #tpu.memory_space<vmem>>, vector<1x1x128xf32>
    %23 = vector.shape_cast %22 : vector<1x1x128xf32> to vector<1x128xf32>
    %cst_16 = arith.constant dense<0.000000e+00> : vector<8x128xf32>
    %24 = tpu.matmul %19, %21, %cst_16 {dimension_numbers = #tpu.dot_dimension_numbers<[1], [1], [0], [0], [0, 0, 1, 0], [], []>} : vector<8x128xf32>, vector<128x128xf32>, vector<8x128xf32> -> vector<8x128xf32>
    %25 = vector.broadcast %23 : vector<1x128xf32> to vector<8x128xf32>
    %26 = arith.addf %24, %25 : vector<8x128xf32>
    %cst_17 = arith.constant 0.000000e+00 : f32
    %27 = vector.broadcast %cst_17 : f32 to vector<8x128xf32>
    %28 = arith.maximumf %26, %27 : vector<8x128xf32>
    %c2 = arith.constant 2 : index
    %c0_18 = arith.constant 0 : index
    %c0_19 = arith.constant 0 : index
    %29 = vector.load %arg2[%c2, %c0_18, %c0_19] : memref<4x128x128xf32, #tpu.memory_space<vmem>>, vector<1x128x128xf32>
    %30 = vector.shape_cast %29 : vector<1x128x128xf32> to vector<128x128xf32>
    %c2_20 = arith.constant 2 : index
    %c0_21 = arith.constant 0 : index
    %c0_22 = arith.constant 0 : index
    %31 = vector.load %arg3[%c2_20, %c0_21, %c0_22] : memref<4x1x128xf32, #tpu.memory_space<vmem>>, vector<1x1x128xf32>
    %32 = vector.shape_cast %31 : vector<1x1x128xf32> to vector<1x128xf32>
    %cst_23 = arith.constant dense<0.000000e+00> : vector<8x128xf32>
    %33 = tpu.matmul %28, %30, %cst_23 {dimension_numbers = #tpu.dot_dimension_numbers<[1], [1], [0], [0], [0, 0, 1, 0], [], []>} : vector<8x128xf32>, vector<128x128xf32>, vector<8x128xf32> -> vector<8x128xf32>
    %34 = vector.broadcast %32 : vector<1x128xf32> to vector<8x128xf32>
    %35 = arith.addf %33, %34 : vector<8x128xf32>
    %cst_24 = arith.constant 0.000000e+00 : f32
    %36 = vector.broadcast %cst_24 : f32 to vector<8x128xf32>
    %37 = arith.maximumf %35, %36 : vector<8x128xf32>
    %c3 = arith.constant 3 : index
    %c0_25 = arith.constant 0 : index
    %c0_26 = arith.constant 0 : index
    %38 = vector.load %arg2[%c3, %c0_25, %c0_26] : memref<4x128x128xf32, #tpu.memory_space<vmem>>, vector<1x128x128xf32>
    %39 = vector.shape_cast %38 : vector<1x128x128xf32> to vector<128x128xf32>
    %c3_27 = arith.constant 3 : index
    %c0_28 = arith.constant 0 : index
    %c0_29 = arith.constant 0 : index
    %40 = vector.load %arg3[%c3_27, %c0_28, %c0_29] : memref<4x1x128xf32, #tpu.memory_space<vmem>>, vector<1x1x128xf32>
    %41 = vector.shape_cast %40 : vector<1x1x128xf32> to vector<1x128xf32>
    %cst_30 = arith.constant dense<0.000000e+00> : vector<8x128xf32>
    %42 = tpu.matmul %37, %39, %cst_30 {dimension_numbers = #tpu.dot_dimension_numbers<[1], [1], [0], [0], [0, 0, 1, 0], [], []>} : vector<8x128xf32>, vector<128x128xf32>, vector<8x128xf32> -> vector<8x128xf32>
    %43 = vector.broadcast %41 : vector<1x128xf32> to vector<8x128xf32>
    %44 = arith.addf %42, %43 : vector<8x128xf32>
    %cst_31 = arith.constant 0.000000e+00 : f32
    %45 = vector.broadcast %cst_31 : f32 to vector<8x128xf32>
    %46 = arith.maximumf %44, %45 : vector<8x128xf32>
    %c0_32 = arith.constant 0 : index
    %c0_33 = arith.constant 0 : index
    %47 = vector.load %arg4[%c0_32, %c0_33] : memref<8x128xf32, #tpu.memory_space<vmem>>, vector<8x128xf32>
    tpu.vector_store %arg4[%c0_32, %c0_33], %46 {strides = array<i32>} : memref<8x128xf32, #tpu.memory_space<vmem>>, vector<8x128xf32>,
    return
  }
  func.func @transform_0(%arg0: i32) -> (i32, i32) {
    %c0_i32 = arith.constant 0 : i32
    %c0_i32_0 = arith.constant 0 : i32
    %c0_i32_1 = arith.constant 0 : i32
    return %c0_i32, %c0_i32_0 : i32, i32
  }
  func.func @transform_1(%arg0: i32) -> (i32, i32, i32) {
    %c0_i32 = arith.constant 0 : i32
    %c0_i32_0 = arith.constant 0 : i32
    %c0_i32_1 = arith.constant 0 : i32
    %c0_i32_2 = arith.constant 0 : i32
    return %c0_i32, %c0_i32_0, %c0_i32_1 : i32, i32, i32
  }
  func.func @transform_2(%arg0: i32) -> (i32, i32, i32) {
    %c0_i32 = arith.constant 0 : i32
    %c0_i32_0 = arith.constant 0 : i32
    %c0_i32_1 = arith.constant 0 : i32
    %c0_i32_2 = arith.constant 0 : i32
    return %c0_i32, %c0_i32_0, %c0_i32_1 : i32, i32, i32
  }
  func.func @transform_3(%arg0: i32) -> (i32, i32) {
    %c0_i32 = arith.constant 0 : i32
    %c0_i32_0 = arith.constant 0 : i32
    %c0_i32_1 = arith.constant 0 : i32
    return %c0_i32, %c0_i32_0 : i32, i32
  }
}

</mosaic_0001>

<bundles_post_ra>
// kernel: tpu_custom_call.1
= control target key start
LH: loop header
LB: loop body
LE: loop exit
PB: predicated region body
PF: predicated region fallthrough
CT: control target
= control target key end

     0   :  { %8 = vsyncpa [#allocation3], 0  ;;  %s891_s0 = inlined_call_operand.hbm [shape: f32[8,128], index: 0, kind: input, shape index: {}]   ;;  %s892_s1 = inlined_call_operand.hbm [shape: f32[4,128,128], index: 1, kind: input, shape index: {}]   ;;  %s893_s2 = inlined_call_operand.hbm [shape: f32[4,1,128], index: 2, kind: input, shape index: {}]   ;;  %s894_s3 = inlined_call_operand.hbm [shape: f32[8,128], index: 3, kind: output, shape index: {}]  }
   0x1   :  { %9 = vsyncpa [#allocation6], 0 }
   0x2   :  { %10 = vsyncpa [#allocation4], 0  ;;  %s772_s12 = smov [#allocation5]  }
   0x3   :  { %s26_s13 = sshll.u32 %s772_s12, 4  ;;  %s27_s13 = int_to_ptr.vmem [resolvable:$true] %s26_s13 }
   0x4   :  { %s694_s14 = scalar_lea.vmem %s27_s13, 8192  ;;  %p699_p1 = scmp.lt.s32.totalorder %s27_s13, %s27_s13 }
   0x5   :  { %p695_p0 = scmp.ne.s32.totalorder %s27_s13, %s694_s14  ;;  %p700_p2 = scmp.lt.s32.totalorder %s694_s14, %s694_s14 }
   0x7   :  { %p701_p3 = por %p700_p2, %p699_p1 }
   0x9   :  { %p702_p4 = pnand %p701_p3, %p695_p0 }
   0xb   :  { %705 = shalt.err (!%p702_p4)
}
   0xc   :  { %s773_s15 = smov 128   ;;  %s774_s16 = smov 8  }
   0xd   :  { %32 = dma.hbm_to_vmem [thread:$0]  %s892_s1, 8192, %s27_s13, [#allocation6], %s773_s15, %s773_s15, %s774_s16  }
   0xe   :  { %s775_s19 = smov [#allocation2]   ;;  %s776_s21 = smov [#allocation7]  }
   0xf   :  { %s17_s20 = sshll.u32 %s775_s19, 4  ;;  %s38_s22 = sshll.u32 %s776_s21, 4  ;;  %s18_s20 = int_to_ptr.vmem [resolvable:$true] %s17_s20  ;;  %s39_s22 = int_to_ptr.vmem [resolvable:$true] %s38_s22 }
  0x10   :  { %s714_s23 = scalar_lea.vmem %s18_s20, 128  ;;  %p719_p6 = scmp.lt.s32.totalorder %s18_s20, %s18_s20 }
  0x11   :  { %p715_p5 = scmp.ne.s32.totalorder %s18_s20, %s714_s23  ;;  %p720_p7 = scmp.lt.s32.totalorder %s714_s23, %s714_s23 }
  0x13   :  { %p721_p8 = por %p720_p7, %p719_p6 }
  0x15   :  { %p722_p9 = pnand %p721_p8, %p715_p5 }
  0x17   :  { %725 = shalt.err (!%p722_p9)
}
  0x18   :  { %20 = dma.hbm_to_vmem [thread:$0]  %s891_s0, 128, %s18_s20, [#allocation3]  }
  0x19   :  { %s734_s26 = scalar_lea.vmem %s39_s22, 64  ;;  %p739_p11 = scmp.lt.s32.totalorder %s39_s22, %s39_s22 }
  0x1a   :  { %p735_p10 = scmp.ne.s32.totalorder %s39_s22, %s734_s26  ;;  %p740_p12 = scmp.lt.s32.totalorder %s734_s26, %s734_s26 }
  0x1c   :  { %p741_p13 = por %p740_p12, %p739_p11 }
  0x1e   :  { %p742_p0 = pnand %p741_p13, %p735_p10 }
  0x20   :  { %745 = shalt.err (!%p742_p0)
}
  0x21   :  { %s777_s1 = smov 16   ;;  %s778_s27 = smov 1  }
  0x22   :  { %44 = dma.hbm_to_vmem [thread:$0]  %s893_s2, 64, %s39_s22, [#allocation6], %s777_s1, %s777_s1, %s778_s27  }
  0x23   :  { %766 = dma.done.wait [#allocation3], 128  }
  0x24   :  { %767 = vsyncadd [#allocation3], 4294967168 }
  0x25   :  { %768 = dma.done.wait [#allocation6], 8256  }
  0x26   :  { %769 = vsyncadd [#allocation6], 4294959040  ;;  %v779_v0 = vmov 0.0   ;;  %v813_v1 = vld [vmem:[#allocation2] sm:$0xff]  ;;  %v77_v4 = vld [vmem:[#allocation5 + $0x70] sm:$0xff]  ;;  %vm780_vm0 = vmmov 0  }
  0x27   :  { %534 = vmatprep.subr.mxu0 %v779_v0  ;;  %569 = vmatprep.subr.mxu1 %v779_v0  ;;  %v78_v2 = vld [vmem:[#allocation5 + $0x78] sm:$0xff]  ;;  %v55_v3 = vmul.f32 %v813_v1, %v813_v1  ;;  %v76_v5 = vld [vmem:[#allocation5 + $0x68] sm:$0xff]  ;;  %v75_v6 = vld [vmem:[#allocation5 + $0x60] sm:$0xff]  ;;  %s781_s0 = smov [#allocation8]  }
  0x28   :  { %535 = vmatpush3.xpose.msra.mxu0 %v78_v2  ;;  %v74_v7 = vld [vmem:[#allocation5 + $0x58] sm:$0xff]  ;;  %v73_v8 = vld [vmem:[#allocation5 + $0x50] sm:$0xff]  ;;  %566 = vmatprep.mubr.msk.f32.mxu0 %vm780_vm0, %v779_v0  ;;  %v72_v9 = vld [vmem:[#allocation5 + $0x48] sm:$0xff]  ;;  %s452_s2 = sshll.u32 %s781_s0, 4  ;;  %s453_s2 = int_to_ptr.vmem [resolvable:$true] %s452_s2 }
  0x29   :  { %536 = vmatprep.subr.mxu0 %v779_v0  ;;  %56 = vadd.xlane.f32.xlu0 %v55_v3  ;;  %v71_v10 = vld [vmem:[#allocation5 + $0x40] sm:$0xff]  ;;  %v70_v11 = vld [vmem:[#allocation5 + $0x38] sm:$0xff]  ;;  %v69_v13 = vld [vmem:[#allocation5 + $0x30] sm:$0xff]  ;;  %s746_s30 = scalar_lea.vmem %s453_s2, 128  ;;  %p751_p2 = scmp.lt.s32.totalorder %s453_s2, %s453_s2 }
  0x2a   :  { %601 = vmatprep.mubr.msk.f32.mxu1 %vm780_vm0, %v779_v0  ;;  %v173_v12 = vld [vmem:[#allocation5 + $0xf8] sm:$0xff]  ;;  %v172_v14 = vld [vmem:[#allocation5 + $0xf0] sm:$0xff]  ;;  %v68_v15 = vld [vmem:[#allocation5 + $0x28] sm:$0xff]  ;;  %p747_p1 = scmp.ne.s32.totalorder %s453_s2, %s746_s30  ;;  %p752_p3 = scmp.lt.s32.totalorder %s746_s30, %s746_s30 }
  0x2b   :  { %570 = vmatpush3.xpose.msra.mxu1 %v173_v12  ;;  %v171_v16 = vld [vmem:[#allocation5 + $0xe8] sm:$0xff]  ;;  %v67_v17 = vld [vmem:[#allocation5 + $0x20] sm:$0xff]  ;;  %v66_v19 = vld [vmem:[#allocation5 + $0x18] sm:$0xff] }
  0x2c   :  { %537 = vmatpush3.xpose.msra.mxu0 %v77_v4  ;;  %571 = vmatprep.subr.mxu1 %v779_v0  ;;  %v170_v18 = vld [vmem:[#allocation5 + $0xe0] sm:$0xff]  ;;  %v169_v20 = vld [vmem:[#allocation5 + $0xd8] sm:$0xff]  ;;  %v65_v21 = vld [vmem:[#allocation5 + $0x10] sm:$0xff]  ;;  %p753_p4 = por %p752_p3, %p751_p2 }
  0x2d   :  { %538 = vmatprep.subr.mxu0 %v779_v0  ;;  %v168_v22 = vld [vmem:[#allocation5 + $0xd0] sm:$0xff]  ;;  %v64_v23 = vld [vmem:[#allocation5 + $0x8] sm:$0xff]  ;;  %v63_v25 = vld [vmem:[#allocation5] sm:$0xff] }
  0x2e   :  { %v167_v24 = vld [vmem:[#allocation5 + $0xc8] sm:$0xff]  ;;  %v166_v26 = vld [vmem:[#allocation5 + $0xc0] sm:$0xff]  ;;  %v165_v27 = vld [vmem:[#allocation5 + $0xb8] sm:$0xff]  ;;  %p754_p5 = pnand %p753_p4, %p747_p1 }
  0x2f   :  { %572 = vmatpush3.xpose.msra.mxu1 %v172_v14  ;;  %v164_v28 = vld [vmem:[#allocation5 + $0xb0] sm:$0xff]  ;;  %v163_v29 = vld [vmem:[#allocation5 + $0xa8] sm:$0xff]  ;;  %v162_v30 = vld [vmem:[#allocation5 + $0xa0] sm:$0xff] }
  0x30   :  { %539 = vmatpush3.xpose.msra.mxu0 %v76_v5  ;;  %573 = vmatprep.subr.mxu1 %v779_v0  ;;  %v161_v31 = vld [vmem:[#allocation5 + $0x98] sm:$0xff]  ;;  %v160_v32 = vld [vmem:[#allocation5 + $0x90] sm:$0xff]  ;;  %v159_v33 = vld [vmem:[#allocation5 + $0x88] sm:$0xff] }
  0x31   :  { %540 = vmatprep.subr.mxu0 %v779_v0  ;;  %v158_v39 = vld [vmem:[#allocation5 + $0x80] sm:$0xff]  ;;  %v269_v40 = vld [vmem:[#allocation5 + $0x178] sm:$0xff]  ;;  %v268_v41 = vld [vmem:[#allocation5 + $0x170] sm:$0xff] }
  0x32   :  { %v267_v42 = vld [vmem:[#allocation5 + $0x168] sm:$0xff]  ;;  %v266_v43 = vld [vmem:[#allocation5 + $0x160] sm:$0xff]  ;;  %v265_v44 = vld [vmem:[#allocation5 + $0x158] sm:$0xff] }
  0x33   :  { %574 = vmatpush3.xpose.msra.mxu1 %v171_v16  ;;  %v264_v45 = vld [vmem:[#allocation5 + $0x150] sm:$0xff]  ;;  %v263_v46 = vld [vmem:[#allocation5 + $0x148] sm:$0xff]  ;;  %v262_v47 = vld [vmem:[#allocation5 + $0x140] sm:$0xff] }
  0x34   :  { %541 = vmatpush3.xpose.msra.mxu0 %v75_v6  ;;  %575 = vmatprep.subr.mxu1 %v779_v0  ;;  %v261_v48 = vld [vmem:[#allocation5 + $0x138] sm:$0xff]  ;;  %v260_v49 = vld [vmem:[#allocation5 + $0x130] sm:$0xff]  ;;  %v259_v50 = vld [vmem:[#allocation5 + $0x128] sm:$0xff] }
  0x35   :  { %542 = vmatprep.subr.mxu0 %v779_v0  ;;  %v258_v51 = vld [vmem:[#allocation5 + $0x120] sm:$0xff]  ;;  %v257_v52 = vld [vmem:[#allocation5 + $0x118] sm:$0xff]  ;;  %v256_v53 = vld [vmem:[#allocation5 + $0x110] sm:$0xff] }
  0x36   :  { %v255_v54 = vld [vmem:[#allocation5 + $0x108] sm:$0xff]  ;;  %v462_v55 = vld [vmem:[#allocation7] ss:$0 sm:$0xff]  ;;  %v365_v61 = vld [vmem:[#allocation5 + $0x1f8] sm:$0xff] }
  0x37   :  { %576 = vmatpush3.xpose.msra.mxu1 %v170_v18  ;;  %v254_v60 = vld [vmem:[#allocation5 + $0x100] sm:$0xff]  ;;  %v364_v62 = vld [vmem:[#allocation5 + $0x1f0] sm:$0xff]  ;;  %v363_v63 = vld [vmem:[#allocation5 + $0x1e8] sm:$0xff] }
  0x38   :  { %543 = vmatpush3.xpose.msra.mxu0 %v74_v7  ;;  %577 = vmatprep.subr.mxu1 %v779_v0  ;;  %v361_v2 = vld [vmem:[#allocation5 + $0x1d8] sm:$0xff]  ;;  %v360_v3 = vld [vmem:[#allocation5 + $0x1d0] sm:$0xff]  ;;  %v359_v4 = vld [vmem:[#allocation5 + $0x1c8] sm:$0xff] }
  0x39   :  { %544 = vmatprep.subr.mxu0 %v779_v0  ;;  %v358_v5 = vld [vmem:[#allocation5 + $0x1c0] sm:$0xff]  ;;  %v357_v6 = vld [vmem:[#allocation5 + $0x1b8] sm:$0xff]  ;;  %v356_v7 = vld [vmem:[#allocation5 + $0x1b0] sm:$0xff] }
  0x3a   :  { %v351_v12 = vld [vmem:[#allocation5 + $0x188] sm:$0xff]  ;;  %v350_v18 = vld [vmem:[#allocation5 + $0x180] sm:$0xff] }
  0x3b   :  { %578 = vmatpush3.xpose.msra.mxu1 %v169_v20 }
  0x3c   :  { %545 = vmatpush3.xpose.msra.mxu0 %v73_v8  ;;  %579 = vmatprep.subr.mxu1 %v779_v0  ;;  %v355_v8 = vld [vmem:[#allocation5 + $0x1a8] sm:$0xff] }
  0x3d   :  { %546 = vmatprep.subr.mxu0 %v779_v0 }
  0x3f   :  { %580 = vmatpush3.xpose.msra.mxu1 %v168_v22 }
  0x40   :  { %547 = vmatpush3.xpose.msra.mxu0 %v72_v9  ;;  %581 = vmatprep.subr.mxu1 %v779_v0  ;;  %v354_v9 = vld [vmem:[#allocation5 + $0x1a0] sm:$0xff] }
  0x41   :  { %548 = vmatprep.subr.mxu0 %v779_v0 }
  0x43   :  { %582 = vmatpush3.xpose.msra.mxu1 %v167_v24  ;;  %v465_v24 = vld [vmem:[#allocation7 + $0x3] ss:$0 sm:$0xff] }
  0x44   :  { %549 = vmatpush3.xpose.msra.mxu0 %v71_v10  ;;  %583 = vmatprep.subr.mxu1 %v779_v0  ;;  %v353_v10 = vld [vmem:[#allocation5 + $0x198] sm:$0xff] }
  0x45   :  { %550 = vmatprep.subr.mxu0 %v779_v0 }
  0x47   :  { %584 = vmatpush3.xpose.msra.mxu1 %v166_v26 }
  0x48   :  { %551 = vmatpush3.xpose.msra.mxu0 %v70_v11  ;;  %585 = vmatprep.subr.mxu1 %v779_v0  ;;  %v352_v11 = vld [vmem:[#allocation5 + $0x190] sm:$0xff] }
  0x49   :  { %552 = vmatprep.subr.mxu0 %v779_v0 }
  0x4b   :  { %586 = vmatpush3.xpose.msra.mxu1 %v165_v27 }
  0x4c   :  { %553 = vmatpush3.xpose.msra.mxu0 %v69_v13  ;;  %587 = vmatprep.subr.mxu1 %v779_v0  ;;  %v463_v13 = vld [vmem:[#allocation7 + $0x1] ss:$0 sm:$0xff] }
  0x4d   :  { %554 = vmatprep.subr.mxu0 %v779_v0 }
  0x4f   :  { %588 = vmatpush3.xpose.msra.mxu1 %v164_v28 }
  0x50   :  { %555 = vmatpush3.xpose.msra.mxu0 %v68_v15  ;;  %589 = vmatprep.subr.mxu1 %v779_v0 }
  0x51   :  { %556 = vmatprep.subr.mxu0 %v779_v0 }
  0x53   :  { %590 = vmatpush3.xpose.msra.mxu1 %v163_v29 }
  0x54   :  { %557 = vmatpush3.xpose.msra.mxu0 %v67_v17  ;;  %591 = vmatprep.subr.mxu1 %v779_v0 }
  0x55   :  { %558 = vmatprep.subr.mxu0 %v779_v0 }
  0x57   :  { %592 = vmatpush3.xpose.msra.mxu1 %v162_v30 }
  0x58   :  { %559 = vmatpush3.xpose.msra.mxu0 %v66_v19  ;;  %593 = vmatprep.subr.mxu1 %v779_v0  ;;  %v464_v19 = vld [vmem:[#allocation7 + $0x2] ss:$0 sm:$0xff] }
  0x59   :  { %560 = vmatprep.subr.mxu0 %v779_v0 }
  0x5b   :  { %594 = vmatpush3.xpose.msra.mxu1 %v161_v31 }
  0x5c   :  { %561 = vmatpush3.xpose.msra.mxu0 %v65_v21  ;;  %595 = vmatprep.subr.mxu1 %v779_v0 }
  0x5d   :  { %562 = vmatprep.subr.mxu0 %v779_v0 }
  0x5f   :  { %596 = vmatpush3.xpose.msra.mxu1 %v160_v32 }
  0x60   :  { %563 = vmatpush3.xpose.msra.mxu0 %v64_v23  ;;  %597 = vmatprep.subr.mxu1 %v779_v0 }
  0x61   :  { %564 = vmatprep.subr.mxu0 %v779_v0 }
  0x63   :  { %598 = vmatpush3.xpose.msra.mxu1 %v159_v33 }
  0x64   :  { %565 = vmatpush3.xpose.msra.mxu0 %v63_v25  ;;  %599 = vmatprep.subr.mxu1 %v779_v0 }
  0x65   :  { %604 = vmatprep.subr.mxu0 %v779_v0 }
  0x67   :  { %600 = vmatpush3.xpose.msra.mxu1 %v158_v39 }
  0x68   :  { %639 = vmatprep.subr.mxu1 %v779_v0 }
  0xb2   :  { %v57_v34 = vpop.xlane.xlu0 %56 }
  0xb3   :  { %v59_v35 = vmul.f32 0.0078125, %v57_v34 }
  0xb5   :  { %v60_v36 = vadd.f32 1e-08, %v59_v35 }
  0xb7   :  { %684 = vrsqrt.f32 %v60_v36 }
  0xc4   :  { %v685_v37 = vpop.eup %684 }
  0xc5   :  { %v62_v38 = vmul.f32 %v685_v37, %v813_v1  ;;  %v362_v1 = vld [vmem:[#allocation5 + $0x1e0] sm:$0xff] }
  0xc7   :  { %567 = vmatmul.mubr.f32.vlgmr.msra.gmra.mxu0 %v62_v38 }
  0xc8   :  { %636 = vmatprep.mubr.msk.f32.mxu0 %vm780_vm0, %v779_v0  ;;  %605 = vmatpush3.xpose.msra.mxu0 %v269_v40 }
  0xc9   :  { %606 = vmatprep.subr.mxu0 %v779_v0 }
  0xcc   :  { %607 = vmatpush3.xpose.msra.mxu0 %v268_v41 }
  0xcd   :  { %608 = vmatprep.subr.mxu0 %v779_v0 }
  0xd0   :  { %609 = vmatpush3.xpose.msra.mxu0 %v267_v42 }
  0xd1   :  { %610 = vmatprep.subr.mxu0 %v779_v0 }
  0xd4   :  { %611 = vmatpush3.xpose.msra.mxu0 %v266_v43 }
  0xd5   :  { %612 = vmatprep.subr.mxu0 %v779_v0 }
  0xd8   :  { %613 = vmatpush3.xpose.msra.mxu0 %v265_v44 }
  0xd9   :  { %614 = vmatprep.subr.mxu0 %v779_v0 }
  0xdc   :  { %615 = vmatpush3.xpose.msra.mxu0 %v264_v45 }
  0xdd   :  { %616 = vmatprep.subr.mxu0 %v779_v0 }
  0xe0   :  { %617 = vmatpush3.xpose.msra.mxu0 %v263_v46 }
  0xe1   :  { %618 = vmatprep.subr.mxu0 %v779_v0 }
  0xe4   :  { %619 = vmatpush3.xpose.msra.mxu0 %v262_v47 }
  0xe5   :  { %620 = vmatprep.subr.mxu0 %v779_v0 }
  0xe8   :  { %621 = vmatpush3.xpose.msra.mxu0 %v261_v48 }
  0xe9   :  { %622 = vmatprep.subr.mxu0 %v779_v0 }
  0xec   :  { %623 = vmatpush3.xpose.msra.mxu0 %v260_v49 }
  0xed   :  { %624 = vmatprep.subr.mxu0 %v779_v0 }
  0xf0   :  { %625 = vmatpush3.xpose.msra.mxu0 %v259_v50 }
  0xf1   :  { %626 = vmatprep.subr.mxu0 %v779_v0 }
  0xf4   :  { %627 = vmatpush3.xpose.msra.mxu0 %v258_v51 }
  0xf5   :  { %628 = vmatprep.subr.mxu0 %v779_v0 }
  0xf8   :  { %629 = vmatpush3.xpose.msra.mxu0 %v257_v52 }
  0xf9   :  { %630 = vmatprep.subr.mxu0 %v779_v0 }
  0xfc   :  { %631 = vmatpush3.xpose.msra.mxu0 %v256_v53 }
  0xfd   :  { %632 = vmatprep.subr.mxu0 %v779_v0 }
 0x100   :  { %633 = vmatpush3.xpose.msra.mxu0 %v255_v54 }
 0x101   :  { %634 = vmatprep.subr.mxu0 %v779_v0 }
 0x104   :  { %635 = vmatpush3.xpose.msra.mxu0 %v254_v60 }
 0x187   :  { %v152_v56 = vpop.f32.mrf.mxu0 }
 0x188   :  { %v153_v57 = vadd.f32 %v462_v55, %v152_v56 }
 0x189   :  { %v568_v58 = vpop.f32.mrf.mxu0 }
 0x18a   :  { %v156_v59 = vmax.f32 %v153_v57, 0.0 }
 0x18c   :  { %602 = vmatmul.mubr.f32.vlgmr.msra.gmra.mxu1 %v156_v59 }
 0x18d   :  { %671 = vmatprep.mubr.msk.f32.mxu1 %vm780_vm0, %v779_v0  ;;  %640 = vmatpush3.xpose.msra.mxu1 %v365_v61 }
 0x18e   :  { %641 = vmatprep.subr.mxu1 %v779_v0 }
 0x191   :  { %642 = vmatpush3.xpose.msra.mxu1 %v364_v62 }
 0x192   :  { %643 = vmatprep.subr.mxu1 %v779_v0 }
 0x195   :  { %644 = vmatpush3.xpose.msra.mxu1 %v363_v63 }
 0x196   :  { %645 = vmatprep.subr.mxu1 %v779_v0 }
 0x199   :  { %646 = vmatpush3.xpose.msra.mxu1 %v362_v1 }
 0x19a   :  { %647 = vmatprep.subr.mxu1 %v779_v0 }
 0x19d   :  { %648 = vmatpush3.xpose.msra.mxu1 %v361_v2 }
 0x19e   :  { %649 = vmatprep.subr.mxu1 %v779_v0 }
 0x1a1   :  { %650 = vmatpush3.xpose.msra.mxu1 %v360_v3 }
 0x1a2   :  { %651 = vmatprep.subr.mxu1 %v779_v0 }
 0x1a5   :  { %652 = vmatpush3.xpose.msra.mxu1 %v359_v4 }
 0x1a6   :  { %653 = vmatprep.subr.mxu1 %v779_v0 }
 0x1a9   :  { %654 = vmatpush3.xpose.msra.mxu1 %v358_v5 }
 0x1aa   :  { %655 = vmatprep.subr.mxu1 %v779_v0 }
 0x1ad   :  { %656 = vmatpush3.xpose.msra.mxu1 %v357_v6 }
 0x1ae   :  { %657 = vmatprep.subr.mxu1 %v779_v0 }
 0x1b1   :  { %658 = vmatpush3.xpose.msra.mxu1 %v356_v7 }
 0x1b2   :  { %659 = vmatprep.subr.mxu1 %v779_v0 }
 0x1b5   :  { %660 = vmatpush3.xpose.msra.mxu1 %v355_v8 }
 0x1b6   :  { %661 = vmatprep.subr.mxu1 %v779_v0 }
 0x1b9   :  { %662 = vmatpush3.xpose.msra.mxu1 %v354_v9 }
 0x1ba   :  { %663 = vmatprep.subr.mxu1 %v779_v0 }
 0x1bd   :  { %664 = vmatpush3.xpose.msra.mxu1 %v353_v10 }
 0x1be   :  { %665 = vmatprep.subr.mxu1 %v779_v0 }
 0x1c1   :  { %666 = vmatpush3.xpose.msra.mxu1 %v352_v11 }
 0x1c2   :  { %667 = vmatprep.subr.mxu1 %v779_v0 }
 0x1c5   :  { %668 = vmatpush3.xpose.msra.mxu1 %v351_v12 }
 0x1c6   :  { %669 = vmatprep.subr.mxu1 %v779_v0 }
 0x1c9   :  { %670 = vmatpush3.xpose.msra.mxu1 %v350_v18 }
 0x24c   :  { %v248_v14 = vpop.f32.mrf.mxu1 }
 0x24d   :  { %v249_v15 = vadd.f32 %v463_v13, %v248_v14 }
 0x24e   :  { %v603_v16 = vpop.f32.mrf.mxu1 }
 0x24f   :  { %v252_v17 = vmax.f32 %v249_v15, 0.0 }
 0x251   :  { %637 = vmatmul.mubr.f32.vlgmr.msra.gmra.mxu0 %v252_v17 }
 0x311   :  { %v344_v20 = vpop.f32.mrf.mxu0 }
 0x312   :  { %v345_v21 = vadd.f32 %v464_v19, %v344_v20 }
 0x313   :  { %v638_v22 = vpop.f32.mrf.mxu0 }
 0x314   :  { %v348_v23 = vmax.f32 %v345_v21, 0.0 }
 0x316   :  { %672 = vmatmul.mubr.f32.vlgmr.msra.gmra.mxu1 %v348_v23 }
 0x3d6   :  { %v440_v25 = vpop.f32.mrf.mxu1 }
 0x3d7   :  { %v441_v26 = vadd.f32 %v465_v24, %v440_v25 }
 0x3d8   :  { %v673_v0 = vpop.f32.mrf.mxu1 }
 0x3d9   :  { %v444_v27 = vmax.f32 %v441_v26, 0.0 }
 0x3db   :  { %445 = vst [vmem:[#allocation8] sm:$0xff] %v444_v27 }
 0x3dc   :  { %757 = shalt.err (!%p754_p5)
}
 0x3dd   :  { %455 = dma.vmem_to_hbm [thread:$0]  %s453_s2, 128, %s894_s3, [#allocation4]  }
 0x3de   :  { %770 = dma.done.wait [#allocation4], 128  }
 0x3df   :  { %771 = vsyncadd [#allocation4], 4294967168 }
 0x3e0   :  { %459 = vsyncpa [#allocation3], 1 }
 0x3e1   :  { %460 = vsyncpa [#allocation6], 1 }
 0x3e2   :  { %461 = vsyncpa [#allocation4], 1 }

</bundles_post_ra>
